<compile_context>
chip_gen: v5e
topology: v5e:2x2
jax: 0.10.0
libtpu: 0.0.40
codegen_flags: <defaults>
</compile_context>

<pallas_src>
import functools

import jax
import jax.numpy as jnp
from jax.experimental import pallas as pl
from jax.experimental.pallas import tpu as pltpu


# ----------------------------------------------------------------------------
# Sizing helpers
# ----------------------------------------------------------------------------
def _fc_tiling(vocab_size):
    """Lane-dense vocab tile + padded vocab (decided once; used by init and fwd)."""
    if vocab_size >= 2048:
        tn = 2048                                    # fixed large tile -> ~roofline weight stream
    else:
        tn = ((vocab_size + 127) // 128) * 128       # tiny vocab: a single 128-multiple tile
    v_pad = ((vocab_size + tn - 1) // tn) * tn
    return tn, v_pad


def _pick_batch_tile(batch, num_pixels, encoder_dim,
                     itemsize=2, dma_budget=24 * 1024 * 1024):
    """Batch tile for kernel 1: a multiple of 8 (sublane) that divides B, sized so
    the double-buffered bf16 encoder stream stays within ~24 MiB (fits v7x's
    64 MiB VMEM with headroom; v5e/v6e have 2x the budget)."""
    fits = lambda t: 2 * t * num_pixels * encoder_dim * itemsize <= dma_budget
    for t in (32, 16, 8):            # prefer >= 2 grid steps so both v7x cores get work
        if batch % t == 0 and batch // t >= 2 and fits(t):
            return t
    for t in (32, 16, 8):
        if batch % t == 0 and fits(t):
            return t
    # TODO(synk): batches not a multiple of 8 fall back to one whole-batch step;
    # pad the batch upstream if that ever exceeds the VMEM budget.
    return batch


def _vmem_limit_bytes(default=48 * 1024 * 1024):
    """Scoped VMEM limit ~= 3/4 of physical (96 MiB on v5e/v6e, 48 MiB on v7x)."""
    try:
        cap = getattr(pltpu.get_tpu_info(), "vmem_capacity_bytes", None)
        if cap:
            return int(cap * 3 // 4)
    except Exception:
        pass
    return default


# ----------------------------------------------------------------------------
# Kernel 1: attention + LSTMCell over a batch tile of TB samples
# ----------------------------------------------------------------------------
def _attend_lstm_kernel(
    enc_ref,       # (TB, P, E) bf16  encoder_out block (streamed)
    h0_ref,        # (TB, D)   f32   decoder_hidden_state rows
    c0_ref,        # (TB, D)   f32   decoder_cell_state rows
    emb_ref,       # (TB, M)   bf16  embedding(word) rows
    w_enc_ref,     # (E, A)    bf16  attention.encoder_att.weight^T   (VMEM resident)
    b_enc_ref,     # (1, A)    f32
    w_dec_ref,     # (D, A)    bf16  attention.decoder_att.weight^T
    b_dec_ref,     # (1, A)    f32
    w_full_ref,    # (1, A)    f32   attention.full_att.weight (row vector)
    b_full_ref,    # (1,)      f32   attention.full_att.bias   (SMEM scalar)
    w_ih_emb_ref,  # (M, 4D)   bf16  decode_step.weight_ih^T rows for the embedding
    w_ih_att_ref,  # (E, 4D)   bf16  decode_step.weight_ih^T rows for the attention
    w_hh_ref,      # (D, 4D)   bf16  decode_step.weight_hh^T
    b_lstm_ref,    # (1, 4D)   f32   b_ih + b_hh
    hc_ref,        # out (TB, 2D) f32  [h | c] packed lane-dense
    attn_ref,      # scratch (TB, E) f32
):
    TB, D = h0_ref.shape
    h0 = h0_ref[...]                                 # (TB, D) f32
    c0 = c0_ref[...]                                 # (TB, D) f32
    h0_b = h0.astype(jnp.bfloat16)
    emb = emb_ref[...]                               # (TB, M) bf16
    w_full = w_full_ref[...]                         # (1, A)  f32
    b_full = b_full_ref[0]

    # decoder_att for the whole batch tile: one (TB, D) @ (D, A) MXU matmul.
    dec_att = (jnp.dot(h0_b, w_dec_ref[...], preferred_element_type=jnp.float32)
               + b_dec_ref[...])                     # (TB, A)

    # Per-sample attention (the encoder_att matmul already has M = P >= 8; the
    # softmax / weighted sum are small VPU+XLU ops).  Static unroll over TB.
    for t in range(TB):
        enc_t = enc_ref[t]                                               # (P, E) bf16
        e_att = (jnp.dot(enc_t, w_enc_ref[...],
                         preferred_element_type=jnp.float32)
                 + b_enc_ref[...])                                       # (P, A)
        w_t = jnp.maximum(e_att + dec_att[t:t + 1, :], 0.0)              # (P, A)
        # full_att projection to one scalar per pixel (mul + lane reduce).
        logits = jnp.sum(w_t * w_full, axis=-1, keepdims=True) + b_full  # (P, 1)
        # softmax over pixels (PyTorch Softmax(dim=1)); exact reciprocal so
        # alpha sums to 1 (the denominator is a single scalar -> free).
        m = jnp.max(logits, axis=0, keepdims=True)
        ex = jnp.exp(logits - m)
        alpha = ex / jnp.sum(ex, axis=0, keepdims=True)                  # (P, 1)
        # attention-weighted encoding  (== bmm(encoder_out^T, alpha)).
        attn_ref[pl.ds(t, 1), :] = jnp.sum(
            enc_t.astype(jnp.float32) * alpha, axis=0, keepdims=True)    # (1, E)

    attn = attn_ref[...].astype(jnp.bfloat16)        # (TB, E)

    # ---------------- LSTMCell (concat-free, batched at M = TB) ----------------
    gates = (
        jnp.dot(emb, w_ih_emb_ref[...], preferred_element_type=jnp.float32)
        + jnp.dot(attn, w_ih_att_ref[...], preferred_element_type=jnp.float32)
        + jnp.dot(h0_b, w_hh_ref[...], preferred_element_type=jnp.float32)
        + b_lstm_ref[...]
    )                                                # (TB, 4D) f32
    i = jax.nn.sigmoid(gates[:, 0 * D:1 * D])
    f = jax.nn.sigmoid(gates[:, 1 * D:2 * D])
    g = jnp.tanh(gates[:, 2 * D:3 * D])
    o = jax.nn.sigmoid(gates[:, 3 * D:4 * D])
    c_new = f * c0 + i * g
    h_new = o * jnp.tanh(c_new)

    # dropout: identity (eval mode).
    # TODO(synk): train-mode dropout would need pltpu.prng_seed/prng_random_bits.

    # One packed lane-dense output block [h | c].
    hc_ref[:, pl.ds(0, D)] = h_new.astype(hc_ref.dtype)
    hc_ref[:, pl.ds(D, D)] = c_new.astype(hc_ref.dtype)


# ----------------------------------------------------------------------------
# Kernel 2: fc vocab projection, tiled over the vocab (lane) axis
# ----------------------------------------------------------------------------
def _fc_kernel(h_ref, w_fc_ref, b_fc_ref, scores_ref):
    scores_ref[...] = (
        jnp.dot(h_ref[...], w_fc_ref[...], preferred_element_type=jnp.float32)
        + b_fc_ref[...]
    ).astype(scores_ref.dtype)


# ----------------------------------------------------------------------------
# Parameters (synthetic, deterministic).  Weights stored as (in, out), bf16;
# biases f32; fc weights pre-padded to the lane-dense padded vocab.
# ----------------------------------------------------------------------------
def init_params(key, *, attention_dim, decoder_dim, embed_dim, vocab_size,
                encoder_dim):
    ks = jax.random.split(key, 13)
    u = lambda k, shape, s=0.1: jax.random.uniform(k, shape, jnp.float32, -s, s)
    A, D, M, V, E = attention_dim, decoder_dim, embed_dim, vocab_size, encoder_dim
    bf = jnp.bfloat16

    _, v_pad = _fc_tiling(V)
    w_fc = u(ks[12], (D, V))
    b_fc = jnp.zeros((1, V), jnp.float32)
    if v_pad != V:   # pad ONCE at init, never per decode step
        w_fc = jnp.pad(w_fc, ((0, 0), (0, v_pad - V)))
        b_fc = jnp.pad(b_fc, ((0, 0), (0, v_pad - V)))

    return dict(
        embedding=u(ks[0], (V, M)).astype(bf),
        w_enc_att=u(ks[1], (E, A)).astype(bf), b_enc_att=u(ks[2], (1, A)),
        w_dec_att=u(ks[3], (D, A)).astype(bf), b_dec_att=u(ks[4], (1, A)),
        w_full_att=u(ks[5], (1, A)), b_full_att=u(ks[6], (1, 1)),
        # LSTMCell weight_ih^T stored pre-split into its embedding / attention
        # row blocks (concat-free formulation, same math as PyTorch's cat).
        w_ih_emb=u(ks[7], (M, 4 * D)).astype(bf),
        w_ih_att=u(ks[8], (E, 4 * D)).astype(bf),
        b_ih=u(ks[9], (1, 4 * D)),
        w_hh=u(ks[10], (D, 4 * D)).astype(bf), b_hh=u(ks[11], (1, 4 * D)),
        w_fc=w_fc.astype(bf), b_fc=b_fc,
    )


# ----------------------------------------------------------------------------
# Forward = DecoderWithAttention.forward(word, h, c, encoder_out)
# ----------------------------------------------------------------------------
@functools.partial(jax.jit, static_argnames=("vocab_size",))
def decoder_with_attention_forward(params, word, h0, c0, encoder_out, *,
                                   vocab_size):
    B, P, E = encoder_out.shape
    D = h0.shape[1]
    M = params["embedding"].shape[1]
    A = params["w_enc_att"].shape[1]
    D4 = 4 * D

    # Embedding lookup = pure gather: plain-JAX glue (bf16 table).
    emb = params["embedding"][word]                      # (B, M) bf16

    # bf16 feature stream for the MXU.  TODO(synk): in a real decode loop the
    # caller should hold encoder_out in bf16 so this cast happens once, not per step.
    enc_bf = encoder_out.astype(jnp.bfloat16)

    b_lstm = params["b_ih"] + params["b_hh"]             # (1, 4D) f32, always summed
    b_full = params["b_full_att"].reshape((1,))          # scalar -> SMEM

    TB = _pick_batch_tile(B, P, E)
    nb = B // TB
    vmem_limit = _vmem_limit_bytes()

    # Small weights: whole-array VMEM residents (single copy, no per-step
    # double-buffering) -- only the encoder block is pipelined.
    resident = pl.BlockSpec(memory_space=pltpu.MemorySpace.VMEM)

    hc = pl.pallas_call(
        _attend_lstm_kernel,
        out_shape=jax.ShapeDtypeStruct((B, 2 * D), jnp.float32),
        grid=(nb,),
        in_specs=[
            pl.BlockSpec((TB, P, E), lambda b: (b, 0, 0)),      # encoder_out (streamed)
            pl.BlockSpec((TB, D), lambda b: (b, 0)),            # h0 rows
            pl.BlockSpec((TB, D), lambda b: (b, 0)),            # c0 rows
            pl.BlockSpec((TB, M), lambda b: (b, 0)),            # emb rows
            resident, resident,                                 # encoder_att W, b
            resident, resident,                                 # decoder_att W, b
            resident,                                           # full_att weight
            pl.BlockSpec(memory_space=pltpu.MemorySpace.SMEM),  # full_att bias
            resident, resident,                                 # LSTM W_ih (split)
            resident,                                           # LSTM W_hh
            resident,                                           # LSTM bias
        ],
        out_specs=pl.BlockSpec((TB, 2 * D), lambda b: (b, 0)),
        scratch_shapes=[pltpu.VMEM((TB, E), jnp.float32)],
        compiler_params=pltpu.CompilerParams(
            dimension_semantics=("parallel",),
            vmem_limit_bytes=vmem_limit),
    )(enc_bf, h0, c0, emb,
      params["w_enc_att"], params["b_enc_att"],
      params["w_dec_att"], params["b_dec_att"],
      params["w_full_att"], b_full,
      params["w_ih_emb"], params["w_ih_att"], params["w_hh"], b_lstm)

    h_new = hc[:, :D]
    c_new = hc[:, D:]

    # ---- fc: stream pre-padded bf16 w_fc in lane-dense vocab tiles ----
    TN, V_pad = _fc_tiling(vocab_size)
    nj = V_pad // TN
    h_bf = h_new.astype(jnp.bfloat16)

    w_fc_spec = pl.BlockSpec((D, TN), lambda j: (0, j))
    if nj > 2:
        # Deeper weight pipeline hides HBM issue latency on BW-limited chips (v5e).
        w_fc_spec = pl.BlockSpec((D, TN), lambda j: (0, j),
                                 pipeline_mode=pl.Buffered(3))

    # TODO(synk): on v5e the fc weight stream could additionally be overlapped
    # with kernel 1 via a cross-call DMA future (P10); lower priority.
    scores_pad = pl.pallas_call(
        _fc_kernel,
        out_shape=jax.ShapeDtypeStruct((B, V_pad), jnp.float32),
        grid=(nj,),
        in_specs=[
            pl.BlockSpec(memory_space=pltpu.MemorySpace.VMEM),  # h: tiny, resident
            w_fc_spec,                                          # w_fc tile: streamed
            pl.BlockSpec((1, TN), lambda j: (0, j)),            # b_fc tile
        ],
        out_specs=pl.BlockSpec((B, TN), lambda j: (0, j)),
        compiler_params=pltpu.CompilerParams(
            dimension_semantics=("parallel",),
            vmem_limit_bytes=vmem_limit),
    )(h_bf, params["w_fc"], params["b_fc"])

    scores = scores_pad[:, :vocab_size]
    return scores, h_new, c_new


# ----------------------------------------------------------------------------
# Pure-JAX reference (mirrors the PyTorch module, eval mode).  Uses the same
# bf16-stored weights (upcast to f32) and the same bf16 feature precision the
# kernel consumes, with all math in f32.
# ----------------------------------------------------------------------------
def _reference_forward(params, word, h0, c0, encoder_out, *, vocab_size):
    f32 = lambda x: x.astype(jnp.float32)
    emb = f32(params["embedding"][word])
    enc = f32(encoder_out.astype(jnp.bfloat16))          # same quantization as kernel
    enc_att = enc @ f32(params["w_enc_att"]) + params["b_enc_att"]
    dec_att = h0 @ f32(params["w_dec_att"]) + params["b_dec_att"]
    w = jax.nn.relu(enc_att + dec_att[:, None, :])
    logits = jnp.sum(w * params["w_full_att"][None], axis=-1) + params["b_full_att"][0, 0]
    alpha = jax.nn.softmax(logits, axis=1)
    attn = jnp.einsum("bpe,bp->be", enc, alpha)
    gates = (emb @ f32(params["w_ih_emb"]) + attn @ f32(params["w_ih_att"])
             + h0 @ f32(params["w_hh"]) + params["b_ih"] + params["b_hh"])
    D = h0.shape[1]
    i = jax.nn.sigmoid(gates[:, :D])
    f = jax.nn.sigmoid(gates[:, D:2 * D])
    g = jnp.tanh(gates[:, 2 * D:3 * D])
    o = jax.nn.sigmoid(gates[:, 3 * D:])
    c = f * c0 + i * g
    h = o * jnp.tanh(c)
    scores = (h @ f32(params["w_fc"]) + params["b_fc"])[:, :vocab_size]
    return scores, h, c


if __name__ == "__main__":
    # Small shapes consistent with the module's forward.
    B = 2    # batch
    P = 16   # num_pixels
    E = 32   # encoder_dim
    D = 32   # decoder_dim
    A = 32   # attention_dim
    M = 16   # embed_dim
    V = 64   # vocab_size

    key = jax.random.PRNGKey(0)
    kp, kw, kh, kc, ke = jax.random.split(key, 5)

    params = init_params(kp, attention_dim=A, decoder_dim=D, embed_dim=M,
                         vocab_size=V, encoder_dim=E)

    word = jax.random.randint(kw, (B,), 0, V, dtype=jnp.int32)
    h0 = jax.random.normal(kh, (B, D), jnp.float32)
    c0 = jax.random.normal(kc, (B, D), jnp.float32)
    encoder_out = jax.random.normal(ke, (B, P, E), jnp.float32)

    scores, h, c = decoder_with_attention_forward(params, word, h0, c0,
                                                  encoder_out, vocab_size=V)
    jax.block_until_ready((scores, h, c))

    ref_scores, ref_h, ref_c = _reference_forward(params, word, h0, c0,
                                                  encoder_out, vocab_size=V)
    assert scores.shape == (B, V) and h.shape == (B, D) and c.shape == (B, D)
    # Tolerances account for bf16 (MXU-native) activation/weight streams with
    # f32 accumulation; the softmax reciprocal is exact.
    assert jnp.allclose(scores, ref_scores, rtol=2e-2, atol=2e-2)
    assert jnp.allclose(h, ref_h, rtol=2e-2, atol=2e-2)
    assert jnp.allclose(c, ref_c, rtol=2e-2, atol=2e-2)

    print("KERNEL_OK")
</pallas_src>

<mosaic_0001>
module attributes {stable_mosaic.version = 11 : i64} {
  func.func @_fc_kernel(%arg0: i32, %arg1: memref<2x32xbf16, #tpu.memory_space<vmem>>, %arg2: memref<32x128xbf16, #tpu.memory_space<vmem>>, %arg3: memref<1x128xf32, #tpu.memory_space<vmem>>, %arg4: memref<2x128xf32, #tpu.memory_space<vmem>>) attributes {dimension_semantics = [#tpu.dimension_semantics<parallel>], iteration_bounds = array<i64: 1>, scalar_prefetch = 0 : i64, scratch_operands = 0 : i64, tpu.core_type = #tpu.core_type<tc>, window_params = [{pipeline_mode = #tpu.pipeline_mode<synchronous>, transform_indices = @transform_0, window_bounds = array<i64: 2, 32>}, {transform_indices = @transform_1, window_bounds = array<i64: 32, 128>}, {transform_indices = @transform_2, window_bounds = array<i64: 1, 128>}, {transform_indices = @transform_3, window_bounds = array<i64: 2, 128>}]} {
    %c0 = arith.constant 0 : index
    %c0_0 = arith.constant 0 : index
    %0 = vector.load %arg1[%c0, %c0_0] : memref<2x32xbf16, #tpu.memory_space<vmem>>, vector<2x32xbf16>
    %c0_1 = arith.constant 0 : index
    %c0_2 = arith.constant 0 : index
    %1 = vector.load %arg2[%c0_1, %c0_2] : memref<32x128xbf16, #tpu.memory_space<vmem>>, vector<32x128xbf16>
    %cst = arith.constant dense<0.000000e+00> : vector<2x128xf32>
    %2 = tpu.matmul %0, %1, %cst {dimension_numbers = #tpu.dot_dimension_numbers<[1], [0], [0], [1], [0, 0, 1, 1], [], []>} : vector<2x32xbf16>, vector<32x128xbf16>, vector<2x128xf32> -> vector<2x128xf32>
    %c0_3 = arith.constant 0 : index
    %c0_4 = arith.constant 0 : index
    %3 = vector.load %arg3[%c0_3, %c0_4] : memref<1x128xf32, #tpu.memory_space<vmem>>, vector<1x128xf32>
    %4 = vector.broadcast %3 : vector<1x128xf32> to vector<2x128xf32>
    %5 = arith.addf %2, %4 : vector<2x128xf32>
    %c0_5 = arith.constant 0 : index
    %c0_6 = arith.constant 0 : index
    %6 = vector.load %arg4[%c0_5, %c0_6] : memref<2x128xf32, #tpu.memory_space<vmem>>, vector<2x128xf32>
    tpu.vector_store %arg4[%c0_5, %c0_6], %5 {strides = array<i32>} : memref<2x128xf32, #tpu.memory_space<vmem>>, vector<2x128xf32>,
    return
  }
  func.func @transform_0(%arg0: i32) -> (i32, i32) {
    %c0_i32 = arith.constant 0 : i32
    %c0_i32_0 = arith.constant 0 : i32
    %c0_i32_1 = arith.constant 0 : i32
    return %c0_i32, %c0_i32_0 : i32, i32
  }
  func.func @transform_1(%arg0: i32) -> (i32, i32) {
    %c0_i32 = arith.constant 0 : i32
    %c0_i32_0 = arith.constant 0 : i32
    return %c0_i32, %arg0 : i32, i32
  }
  func.func @transform_2(%arg0: i32) -> (i32, i32) {
    %c0_i32 = arith.constant 0 : i32
    %c0_i32_0 = arith.constant 0 : i32
    return %c0_i32, %arg0 : i32, i32
  }
  func.func @transform_3(%arg0: i32) -> (i32, i32) {
    %c0_i32 = arith.constant 0 : i32
    %c0_i32_0 = arith.constant 0 : i32
    return %c0_i32, %arg0 : i32, i32
  }
}

module attributes {stable_mosaic.version = 11 : i64} {
  func.func @_attend_lstm_kernel(%arg0: i32, %arg1: memref<2x16x32xbf16, #tpu.memory_space<vmem>>, %arg2: memref<2x32xf32, #tpu.memory_space<vmem>>, %arg3: memref<2x32xf32, #tpu.memory_space<vmem>>, %arg4: memref<2x16xbf16, #tpu.memory_space<vmem>>, %arg5: memref<32x32xbf16, #tpu.memory_space<vmem>>, %arg6: memref<1x32xf32, #tpu.memory_space<vmem>>, %arg7: memref<32x32xbf16, #tpu.memory_space<vmem>>, %arg8: memref<1x32xf32, #tpu.memory_space<vmem>>, %arg9: memref<1x32xf32, #tpu.memory_space<vmem>>, %arg10: memref<1xf32, #tpu.memory_space<smem>>, %arg11: memref<16x128xbf16, #tpu.memory_space<vmem>>, %arg12: memref<32x128xbf16, #tpu.memory_space<vmem>>, %arg13: memref<32x128xbf16, #tpu.memory_space<vmem>>, %arg14: memref<1x128xf32, #tpu.memory_space<vmem>>, %arg15: memref<2x64xf32, #tpu.memory_space<vmem>>, %arg16: memref<2x32xf32, #tpu.memory_space<vmem>>) attributes {dimension_semantics = [#tpu.dimension_semantics<parallel>], iteration_bounds = array<i64: 1>, scalar_prefetch = 0 : i64, scratch_operands = 1 : i64, tpu.core_type = #tpu.core_type<tc>, window_params = [{transform_indices = @transform_0, window_bounds = array<i64: 2, 16, 32>}, {transform_indices = @transform_1, window_bounds = array<i64: 2, 32>}, {transform_indices = @transform_2, window_bounds = array<i64: 2, 32>}, {transform_indices = @transform_3, window_bounds = array<i64: 2, 16>}, {pipeline_mode = #tpu.pipeline_mode<synchronous>, transform_indices = @transform_4, window_bounds = array<i64: 32, 32>}, {pipeline_mode = #tpu.pipeline_mode<synchronous>, transform_indices = @transform_5, window_bounds = array<i64: 1, 32>}, {pipeline_mode = #tpu.pipeline_mode<synchronous>, transform_indices = @transform_6, window_bounds = array<i64: 32, 32>}, {pipeline_mode = #tpu.pipeline_mode<synchronous>, transform_indices = @transform_7, window_bounds = array<i64: 1, 32>}, {pipeline_mode = #tpu.pipeline_mode<synchronous>, transform_indices = @transform_8, window_bounds = array<i64: 1, 32>}, {transform_indices = @transform_9, window_bounds = array<i64: 1>}, {pipeline_mode = #tpu.pipeline_mode<synchronous>, transform_indices = @transform_10, window_bounds = array<i64: 16, 128>}, {pipeline_mode = #tpu.pipeline_mode<synchronous>, transform_indices = @transform_11, window_bounds = array<i64: 32, 128>}, {pipeline_mode = #tpu.pipeline_mode<synchronous>, transform_indices = @transform_12, window_bounds = array<i64: 32, 128>}, {pipeline_mode = #tpu.pipeline_mode<synchronous>, transform_indices = @transform_13, window_bounds = array<i64: 1, 128>}, {transform_indices = @transform_14, window_bounds = array<i64: 2, 64>}]} {
    %c0 = arith.constant 0 : index
    %c0_0 = arith.constant 0 : index
    %0 = vector.load %arg2[%c0, %c0_0] : memref<2x32xf32, #tpu.memory_space<vmem>>, vector<2x32xf32>
    %c0_1 = arith.constant 0 : index
    %c0_2 = arith.constant 0 : index
    %1 = vector.load %arg3[%c0_1, %c0_2] : memref<2x32xf32, #tpu.memory_space<vmem>>, vector<2x32xf32>
    %2 = arith.truncf %0 : vector<2x32xf32> to vector<2x32xbf16>
    %c0_3 = arith.constant 0 : index
    %c0_4 = arith.constant 0 : index
    %3 = vector.load %arg4[%c0_3, %c0_4] : memref<2x16xbf16, #tpu.memory_space<vmem>>, vector<2x16xbf16>
    %c0_5 = arith.constant 0 : index
    %c0_6 = arith.constant 0 : index
    %4 = vector.load %arg9[%c0_5, %c0_6] : memref<1x32xf32, #tpu.memory_space<vmem>>, vector<1x32xf32>
    %c0_7 = arith.constant 0 : index
    %5 = memref.load %arg10[%c0_7] : memref<1xf32, #tpu.memory_space<smem>>
    %c0_8 = arith.constant 0 : index
    %c0_9 = arith.constant 0 : index
    %6 = vector.load %arg7[%c0_8, %c0_9] : memref<32x32xbf16, #tpu.memory_space<vmem>>, vector<32x32xbf16>
    %cst = arith.constant dense<0.000000e+00> : vector<2x32xf32>
    %7 = tpu.matmul %2, %6, %cst {dimension_numbers = #tpu.dot_dimension_numbers<[1], [0], [0], [1], [0, 0, 1, 1], [], []>} : vector<2x32xbf16>, vector<32x32xbf16>, vector<2x32xf32> -> vector<2x32xf32>
    %c0_10 = arith.constant 0 : index
    %c0_11 = arith.constant 0 : index
    %8 = vector.load %arg8[%c0_10, %c0_11] : memref<1x32xf32, #tpu.memory_space<vmem>>, vector<1x32xf32>
    %9 = vector.broadcast %8 : vector<1x32xf32> to vector<2x32xf32>
    %10 = arith.addf %7, %9 : vector<2x32xf32>
    %c0_12 = arith.constant 0 : index
    %c0_13 = arith.constant 0 : index
    %c0_14 = arith.constant 0 : index
    %11 = vector.load %arg1[%c0_12, %c0_13, %c0_14] : memref<2x16x32xbf16, #tpu.memory_space<vmem>>, vector<1x16x32xbf16>
    %12 = vector.shape_cast %11 : vector<1x16x32xbf16> to vector<16x32xbf16>
    %c0_15 = arith.constant 0 : index
    %c0_16 = arith.constant 0 : index
    %13 = vector.load %arg5[%c0_15, %c0_16] : memref<32x32xbf16, #tpu.memory_space<vmem>>, vector<32x32xbf16>
    %cst_17 = arith.constant dense<0.000000e+00> : vector<16x32xf32>
    %14 = tpu.matmul %12, %13, %cst_17 {dimension_numbers = #tpu.dot_dimension_numbers<[1], [0], [0], [1], [0, 0, 1, 1], [], []>} : vector<16x32xbf16>, vector<32x32xbf16>, vector<16x32xf32> -> vector<16x32xf32>
    %c0_18 = arith.constant 0 : index
    %c0_19 = arith.constant 0 : index
    %15 = vector.load %arg6[%c0_18, %c0_19] : memref<1x32xf32, #tpu.memory_space<vmem>>, vector<1x32xf32>
    %16 = vector.broadcast %15 : vector<1x32xf32> to vector<16x32xf32>
    %17 = arith.addf %14, %16 : vector<16x32xf32>
    %18 = vector.extract_strided_slice %10 {offsets = [0, 0], sizes = [1, 32], strides = [1, 1]} : vector<2x32xf32> to vector<1x32xf32>
    %19 = vector.broadcast %18 : vector<1x32xf32> to vector<16x32xf32>
    %20 = arith.addf %17, %19 : vector<16x32xf32>
    %cst_20 = arith.constant 0.000000e+00 : f32
    %21 = vector.broadcast %cst_20 : f32 to vector<16x32xf32>
    %22 = arith.maximumf %20, %21 : vector<16x32xf32>
    %23 = vector.broadcast %4 : vector<1x32xf32> to vector<16x32xf32>
    %24 = arith.mulf %22, %23 : vector<16x32xf32>
    %cst_21 = arith.constant dense<0.000000e+00> : vector<16xf32>
    %25 = vector.multi_reduction <add>, %24, %cst_21 [1] : vector<16x32xf32> to vector<16xf32>
    %26 = vector.shape_cast %25 : vector<16xf32> to vector<16x1xf32>
    %27 = vector.broadcast %5 : f32 to vector<16x1xf32>
    %28 = arith.addf %26, %27 : vector<16x1xf32>
    %cst_22 = arith.constant dense<0xFF800000> : vector<1xf32>
    %29 = vector.multi_reduction <maximumf>, %28, %cst_22 [0] : vector<16x1xf32> to vector<1xf32>
    %30 = vector.shape_cast %29 : vector<1xf32> to vector<1x1xf32>
    %31 = vector.broadcast %30 : vector<1x1xf32> to vector<16x1xf32>
    %32 = arith.subf %28, %31 : vector<16x1xf32>
    %33 = math.exp %32 : vector<16x1xf32>
    %cst_23 = arith.constant dense<0.000000e+00> : vector<1xf32>
    %34 = vector.multi_reduction <add>, %33, %cst_23 [0] : vector<16x1xf32> to vector<1xf32>
    %35 = vector.shape_cast %34 : vector<1xf32> to vector<1x1xf32>
    %36 = vector.broadcast %35 : vector<1x1xf32> to vector<16x1xf32>
    %37 = arith.divf %33, %36 : vector<16x1xf32>
    %38 = arith.extf %12 : vector<16x32xbf16> to vector<16x32xf32>
    %39 = vector.broadcast %37 : vector<16x1xf32> to vector<16x32xf32>
    %40 = arith.mulf %38, %39 : vector<16x32xf32>
    %cst_24 = arith.constant dense<0.000000e+00> : vector<32xf32>
    %41 = vector.multi_reduction <add>, %40, %cst_24 [0] : vector<16x32xf32> to vector<32xf32>
    %42 = vector.shape_cast %41 : vector<32xf32> to vector<1x32xf32>
    %c0_25 = arith.constant 0 : index
    %c0_26 = arith.constant 0 : index
    %43 = vector.load %arg16[%c0_25, %c0_26] : memref<2x32xf32, #tpu.memory_space<vmem>>, vector<1x32xf32>
    tpu.vector_store %arg16[%c0_25, %c0_26], %42 {strides = array<i32>} : memref<2x32xf32, #tpu.memory_space<vmem>>, vector<1x32xf32>,
    %c1 = arith.constant 1 : index
    %c0_27 = arith.constant 0 : index
    %c0_28 = arith.constant 0 : index
    %44 = vector.load %arg1[%c1, %c0_27, %c0_28] : memref<2x16x32xbf16, #tpu.memory_space<vmem>>, vector<1x16x32xbf16>
    %45 = vector.shape_cast %44 : vector<1x16x32xbf16> to vector<16x32xbf16>
    %c0_29 = arith.constant 0 : index
    %c0_30 = arith.constant 0 : index
    %46 = vector.load %arg5[%c0_29, %c0_30] : memref<32x32xbf16, #tpu.memory_space<vmem>>, vector<32x32xbf16>
    %cst_31 = arith.constant dense<0.000000e+00> : vector<16x32xf32>
    %47 = tpu.matmul %45, %46, %cst_31 {dimension_numbers = #tpu.dot_dimension_numbers<[1], [0], [0], [1], [0, 0, 1, 1], [], []>} : vector<16x32xbf16>, vector<32x32xbf16>, vector<16x32xf32> -> vector<16x32xf32>
    %c0_32 = arith.constant 0 : index
    %c0_33 = arith.constant 0 : index
    %48 = vector.load %arg6[%c0_32, %c0_33] : memref<1x32xf32, #tpu.memory_space<vmem>>, vector<1x32xf32>
    %49 = vector.broadcast %48 : vector<1x32xf32> to vector<16x32xf32>
    %50 = arith.addf %47, %49 : vector<16x32xf32>
    %51 = vector.extract_strided_slice %10 {offsets = [1, 0], sizes = [1, 32], strides = [1, 1]} : vector<2x32xf32> to vector<1x32xf32>
    %52 = vector.broadcast %51 : vector<1x32xf32> to vector<16x32xf32>
    %53 = arith.addf %50, %52 : vector<16x32xf32>
    %cst_34 = arith.constant 0.000000e+00 : f32
    %54 = vector.broadcast %cst_34 : f32 to vector<16x32xf32>
    %55 = arith.maximumf %53, %54 : vector<16x32xf32>
    %56 = vector.broadcast %4 : vector<1x32xf32> to vector<16x32xf32>
    %57 = arith.mulf %55, %56 : vector<16x32xf32>
    %cst_35 = arith.constant dense<0.000000e+00> : vector<16xf32>
    %58 = vector.multi_reduction <add>, %57, %cst_35 [1] : vector<16x32xf32> to vector<16xf32>
    %59 = vector.shape_cast %58 : vector<16xf32> to vector<16x1xf32>
    %60 = vector.broadcast %5 : f32 to vector<16x1xf32>
    %61 = arith.addf %59, %60 : vector<16x1xf32>
    %cst_36 = arith.constant dense<0xFF800000> : vector<1xf32>
    %62 = vector.multi_reduction <maximumf>, %61, %cst_36 [0] : vector<16x1xf32> to vector<1xf32>
    %63 = vector.shape_cast %62 : vector<1xf32> to vector<1x1xf32>
    %64 = vector.broadcast %63 : vector<1x1xf32> to vector<16x1xf32>
    %65 = arith.subf %61, %64 : vector<16x1xf32>
    %66 = math.exp %65 : vector<16x1xf32>
    %cst_37 = arith.constant dense<0.000000e+00> : vector<1xf32>
    %67 = vector.multi_reduction <add>, %66, %cst_37 [0] : vector<16x1xf32> to vector<1xf32>
    %68 = vector.shape_cast %67 : vector<1xf32> to vector<1x1xf32>
    %69 = vector.broadcast %68 : vector<1x1xf32> to vector<16x1xf32>
    %70 = arith.divf %66, %69 : vector<16x1xf32>
    %71 = arith.extf %45 : vector<16x32xbf16> to vector<16x32xf32>
    %72 = vector.broadcast %70 : vector<16x1xf32> to vector<16x32xf32>
    %73 = arith.mulf %71, %72 : vector<16x32xf32>
    %cst_38 = arith.constant dense<0.000000e+00> : vector<32xf32>
    %74 = vector.multi_reduction <add>, %73, %cst_38 [0] : vector<16x32xf32> to vector<32xf32>
    %75 = vector.shape_cast %74 : vector<32xf32> to vector<1x32xf32>
    %c1_39 = arith.constant 1 : index
    %c0_40 = arith.constant 0 : index
    %76 = vector.load %arg16[%c1_39, %c0_40] : memref<2x32xf32, #tpu.memory_space<vmem>>, vector<1x32xf32>
    tpu.vector_store %arg16[%c1_39, %c0_40], %75 {strides = array<i32>} : memref<2x32xf32, #tpu.memory_space<vmem>>, vector<1x32xf32>,
    %c0_41 = arith.constant 0 : index
    %c0_42 = arith.constant 0 : index
    %77 = vector.load %arg16[%c0_41, %c0_42] : memref<2x32xf32, #tpu.memory_space<vmem>>, vector<2x32xf32>
    %78 = arith.truncf %77 : vector<2x32xf32> to vector<2x32xbf16>
    %c0_43 = arith.constant 0 : index
    %c0_44 = arith.constant 0 : index
    %79 = vector.load %arg11[%c0_43, %c0_44] : memref<16x128xbf16, #tpu.memory_space<vmem>>, vector<16x128xbf16>
    %cst_45 = arith.constant dense<0.000000e+00> : vector<2x128xf32>
    %80 = tpu.matmul %3, %79, %cst_45 {dimension_numbers = #tpu.dot_dimension_numbers<[1], [0], [0], [1], [0, 0, 1, 1], [], []>} : vector<2x16xbf16>, vector<16x128xbf16>, vector<2x128xf32> -> vector<2x128xf32>
    %c0_46 = arith.constant 0 : index
    %c0_47 = arith.constant 0 : index
    %81 = vector.load %arg12[%c0_46, %c0_47] : memref<32x128xbf16, #tpu.memory_space<vmem>>, vector<32x128xbf16>
    %cst_48 = arith.constant dense<0.000000e+00> : vector<2x128xf32>
    %82 = tpu.matmul %78, %81, %cst_48 {dimension_numbers = #tpu.dot_dimension_numbers<[1], [0], [0], [1], [0, 0, 1, 1], [], []>} : vector<2x32xbf16>, vector<32x128xbf16>, vector<2x128xf32> -> vector<2x128xf32>
    %83 = arith.addf %80, %82 : vector<2x128xf32>
    %c0_49 = arith.constant 0 : index
    %c0_50 = arith.constant 0 : index
    %84 = vector.load %arg13[%c0_49, %c0_50] : memref<32x128xbf16, #tpu.memory_space<vmem>>, vector<32x128xbf16>
    %cst_51 = arith.constant dense<0.000000e+00> : vector<2x128xf32>
    %85 = tpu.matmul %2, %84, %cst_51 {dimension_numbers = #tpu.dot_dimension_numbers<[1], [0], [0], [1], [0, 0, 1, 1], [], []>} : vector<2x32xbf16>, vector<32x128xbf16>, vector<2x128xf32> -> vector<2x128xf32>
    %86 = arith.addf %83, %85 : vector<2x128xf32>
    %c0_52 = arith.constant 0 : index
    %c0_53 = arith.constant 0 : index
    %87 = vector.load %arg14[%c0_52, %c0_53] : memref<1x128xf32, #tpu.memory_space<vmem>>, vector<1x128xf32>
    %88 = vector.broadcast %87 : vector<1x128xf32> to vector<2x128xf32>
    %89 = arith.addf %86, %88 : vector<2x128xf32>
    %90 = vector.extract_strided_slice %89 {offsets = [0, 0], sizes = [2, 32], strides = [1, 1]} : vector<2x128xf32> to vector<2x32xf32>
    %91 = arith.negf %90 : vector<2x32xf32>
    %92 = math.exp %91 : vector<2x32xf32>
    %cst_54 = arith.constant 1.000000e+00 : f32
    %93 = vector.broadcast %cst_54 : f32 to vector<2x32xf32>
    %94 = arith.addf %93, %92 : vector<2x32xf32>
    %95 = arith.divf %93, %94 : vector<2x32xf32>
    %96 = vector.extract_strided_slice %89 {offsets = [0, 32], sizes = [2, 32], strides = [1, 1]} : vector<2x128xf32> to vector<2x32xf32>
    %97 = arith.negf %96 : vector<2x32xf32>
    %98 = math.exp %97 : vector<2x32xf32>
    %cst_55 = arith.constant 1.000000e+00 : f32
    %99 = vector.broadcast %cst_55 : f32 to vector<2x32xf32>
    %100 = arith.addf %99, %98 : vector<2x32xf32>
    %101 = arith.divf %99, %100 : vector<2x32xf32>
    %102 = vector.extract_strided_slice %89 {offsets = [0, 64], sizes = [2, 32], strides = [1, 1]} : vector<2x128xf32> to vector<2x32xf32>
    %103 = math.tanh %102 : vector<2x32xf32>
    %104 = vector.extract_strided_slice %89 {offsets = [0, 96], sizes = [2, 32], strides = [1, 1]} : vector<2x128xf32> to vector<2x32xf32>
    %105 = arith.negf %104 : vector<2x32xf32>
    %106 = math.exp %105 : vector<2x32xf32>
    %cst_56 = arith.constant 1.000000e+00 : f32
    %107 = vector.broadcast %cst_56 : f32 to vector<2x32xf32>
    %108 = arith.addf %107, %106 : vector<2x32xf32>
    %109 = arith.divf %107, %108 : vector<2x32xf32>
    %110 = arith.mulf %101, %1 : vector<2x32xf32>
    %111 = arith.mulf %95, %103 : vector<2x32xf32>
    %112 = arith.addf %110, %111 : vector<2x32xf32>
    %113 = math.tanh %112 : vector<2x32xf32>
    %114 = arith.mulf %109, %113 : vector<2x32xf32>
    %c0_57 = arith.constant 0 : index
    %c0_58 = arith.constant 0 : index
    %115 = vector.load %arg15[%c0_57, %c0_58] : memref<2x64xf32, #tpu.memory_space<vmem>>, vector<2x32xf32>
    tpu.vector_store %arg15[%c0_57, %c0_58], %114 {strides = array<i32>} : memref<2x64xf32, #tpu.memory_space<vmem>>, vector<2x32xf32>,
    %c0_59 = arith.constant 0 : index
    %c32 = arith.constant 32 : index
    %116 = vector.load %arg15[%c0_59, %c32] : memref<2x64xf32, #tpu.memory_space<vmem>>, vector<2x32xf32>
    tpu.vector_store %arg15[%c0_59, %c32], %112 {strides = array<i32>} : memref<2x64xf32, #tpu.memory_space<vmem>>, vector<2x32xf32>,
    return
  }
  func.func @transform_0(%arg0: i32) -> (i32, i32, i32) {
    %c0_i32 = arith.constant 0 : i32
    %c0_i32_0 = arith.constant 0 : i32
    %c0_i32_1 = arith.constant 0 : i32
    return %arg0, %c0_i32, %c0_i32_0 : i32, i32, i32
  }
  func.func @transform_1(%arg0: i32) -> (i32, i32) {
    %c0_i32 = arith.constant 0 : i32
    %c0_i32_0 = arith.constant 0 : i32
    return %arg0, %c0_i32 : i32, i32
  }
  func.func @transform_2(%arg0: i32) -> (i32, i32) {
    %c0_i32 = arith.constant 0 : i32
    %c0_i32_0 = arith.constant 0 : i32
    return %arg0, %c0_i32 : i32, i32
  }
  func.func @transform_3(%arg0: i32) -> (i32, i32) {
    %c0_i32 = arith.constant 0 : i32
    %c0_i32_0 = arith.constant 0 : i32
    return %arg0, %c0_i32 : i32, i32
  }
  func.func @transform_4(%arg0: i32) -> (i32, i32) {
    %c0_i32 = arith.constant 0 : i32
    %c0_i32_0 = arith.constant 0 : i32
    %c0_i32_1 = arith.constant 0 : i32
    return %c0_i32, %c0_i32_0 : i32, i32
  }
  func.func @transform_5(%arg0: i32) -> (i32, i32) {
    %c0_i32 = arith.constant 0 : i32
    %c0_i32_0 = arith.constant 0 : i32
    %c0_i32_1 = arith.constant 0 : i32
    return %c0_i32, %c0_i32_0 : i32, i32
  }
  func.func @transform_6(%arg0: i32) -> (i32, i32) {
    %c0_i32 = arith.constant 0 : i32
    %c0_i32_0 = arith.constant 0 : i32
    %c0_i32_1 = arith.constant 0 : i32
    return %c0_i32, %c0_i32_0 : i32, i32
  }
  func.func @transform_7(%arg0: i32) -> (i32, i32) {
    %c0_i32 = arith.constant 0 : i32
    %c0_i32_0 = arith.constant 0 : i32
    %c0_i32_1 = arith.constant 0 : i32
    return %c0_i32, %c0_i32_0 : i32, i32
  }
  func.func @transform_8(%arg0: i32) -> (i32, i32) {
    %c0_i32 = arith.constant 0 : i32
    %c0_i32_0 = arith.constant 0 : i32
    %c0_i32_1 = arith.constant 0 : i32
    return %c0_i32, %c0_i32_0 : i32, i32
  }
  func.func @transform_9(%arg0: i32) -> i32 {
    %c0_i32 = arith.constant 0 : i32
    %c0_i32_0 = arith.constant 0 : i32
    return %c0_i32 : i32
  }
  func.func @transform_10(%arg0: i32) -> (i32, i32) {
    %c0_i32 = arith.constant 0 : i32
    %c0_i32_0 = arith.constant 0 : i32
    %c0_i32_1 = arith.constant 0 : i32
    return %c0_i32, %c0_i32_0 : i32, i32
  }
  func.func @transform_11(%arg0: i32) -> (i32, i32) {
    %c0_i32 = arith.constant 0 : i32
    %c0_i32_0 = arith.constant 0 : i32
    %c0_i32_1 = arith.constant 0 : i32
    return %c0_i32, %c0_i32_0 : i32, i32
  }
  func.func @transform_12(%arg0: i32) -> (i32, i32) {
    %c0_i32 = arith.constant 0 : i32
    %c0_i32_0 = arith.constant 0 : i32
    %c0_i32_1 = arith.constant 0 : i32
    return %c0_i32, %c0_i32_0 : i32, i32
  }
  func.func @transform_13(%arg0: i32) -> (i32, i32) {
    %c0_i32 = arith.constant 0 : i32
    %c0_i32_0 = arith.constant 0 : i32
    %c0_i32_1 = arith.constant 0 : i32
    return %c0_i32, %c0_i32_0 : i32, i32
  }
  func.func @transform_14(%arg0: i32) -> (i32, i32) {
    %c0_i32 = arith.constant 0 : i32
    %c0_i32_0 = arith.constant 0 : i32
    return %arg0, %c0_i32 : i32, i32
  }
}

</mosaic_0001>

<bundles_post_ra>
// kernel: decoder_with_attention_forward.3
= control target key start
LH: loop header
LB: loop body
LE: loop exit
PB: predicated region body
PF: predicated region fallthrough
CT: control target
= control target key end

     0   :  { %s146_s0 = inlined_call_operand.vmem [shape: bf16[2,32], index: 0, kind: input, shape index: {}]   ;;  %s147_s1 = inlined_call_operand.vmem [shape: bf16[32,128], index: 1, kind: input, shape index: {}]   ;;  %s148_s2 = inlined_call_operand.vmem [shape: f32[1,128], index: 2, kind: input, shape index: {}]   ;;  %s149_s3 = inlined_call_operand.hbm [shape: f32[2,128], index: 3, kind: output, shape index: {}]  }
   0x1   :  { %v81_v0 = vld [vmem:[%s147_s1 + $0x8] sm:$0xff] }
   0x2   :  { %8 = vsyncpa [#allocation3], 0  ;;  %47 = vmatpush.bf16.msra.mxu0 %v81_v0  ;;  %v80_v1 = vld [vmem:[%s147_s1] sm:$0xff]  ;;  %vm37_vm0 = vcmask 261120   ;;  %s110_s20 = smov [#allocation2]   ;;  %s62_s24 = sshll.u32 %s149_s3, 4  ;;  %s63_s24 = int_to_ptr.hbm [resolvable:$true] %s62_s24 }
   0x3   :  { %v16_v2 = vld [vmem:[%s146_s0] sm:$0x1]  ;;  %s60_s21 = sshll.u32 %s110_s20, 4  ;;  %s61_s21 = int_to_ptr.vmem [resolvable:$true] %s60_s21 }
   0x4   :  { %v83_v3 = vld [vmem:[%s148_s2] ss:$0 sm:$0xff] }
   0x6   :  { %48 = vmatpush.bf16.msra.mxu0 %v80_v1 }
   0x9   :  { %79 = vmatmul.msk.bf16.vlgmr.msra.gmra.mxu0 %vm37_vm0, %v16_v2 }
  0x86   :  { %v50_v4 = vpop.f32.mrf.mxu0 }
  0x87   :  { %v51_v5 = vadd.f32 %v83_v3, %v50_v4 }
  0x89   :  { %54 = vst [vmem:[#allocation2] sm:$0x3] %v51_v5 }
  0x8a   :  { %65 = dma.vmem_to_hbm [thread:$0]  %s61_s21, 32, %s63_s24, [#allocation3]  }
  0x8e   :  { %v52_v6 = vpop.f32.mrf.mxu0 }
  0x8f   :  { %108 = dma.done.wait [#allocation3], 32  }
  0x90   :  { %109 = vsyncadd [#allocation3], 4294967264 }
  0x91   :  { %70 = vsyncpa [#allocation3], 1 }

// kernel: decoder_with_attention_forward.2
= control target key start
LH: loop header
LB: loop body
LE: loop exit
PB: predicated region body
PF: predicated region fallthrough
CT: control target
= control target key end

     0   :  { %20 = vsyncpa [#allocation5], 0  ;;  %s841_s0 = inlined_call_operand.vmem [shape: bf16[2,16,32], index: 0, kind: input, shape index: {}]   ;;  %s842_s1 = inlined_call_operand.vmem [shape: f32[2,32], index: 1, kind: input, shape index: {}]   ;;  %s843_s2 = inlined_call_operand.vmem [shape: f32[2,32], index: 2, kind: input, shape index: {}]   ;;  %s844_s3 = inlined_call_operand.vmem [shape: bf16[2,16], index: 3, kind: input, shape index: {}]   ;;  %s845_s4 = inlined_call_operand.vmem [shape: bf16[32,32], index: 4, kind: input, shape index: {}]   ;;  %s846_s5 = inlined_call_operand.vmem [shape: f32[1,32], index: 5, kind: input, shape index: {}]   ;;  %s847_s6 = inlined_call_operand.vmem [shape: bf16[32,32], index: 6, kind: input, shape index: {}]   ;;  %s848_s7 = inlined_call_operand.vmem [shape: f32[1,32], index: 7, kind: input, shape index: {}]   ;;  %s849_s8 = inlined_call_operand.hbm [shape: f32[1,32], index: 8, kind: input, shape index: {}]   ;;  %s850_s9 = inlined_call_operand.<no memory space> [shape: f32[1], index: 9, kind: input, shape index: {}]   ;;  %s851_s10 = inlined_call_operand.hbm [shape: bf16[16,128], index: 10, kind: input, shape index: {}]   ;;  %s852_s11 = inlined_call_operand.vmem [shape: bf16[32,128], index: 11, kind: input, shape index: {}]   ;;  %s853_s12 = inlined_call_operand.vmem [shape: bf16[32,128], index: 12, kind: input, shape index: {}]   ;;  %s854_s13 = inlined_call_operand.vmem [shape: f32[1,128], index: 13, kind: input, shape index: {}]   ;;  %s855_s14 = inlined_call_operand.vmem [shape: f32[2,64], index: 14, kind: output, shape index: {}]  }
   0x1   :  { %s43_s15 = sshll.u32 %s849_s8, 4  ;;  %s44_s15 = int_to_ptr.hbm [resolvable:$true] %s43_s15 }
   0x2   :  { %21 = vsyncpa [#allocation7], 0  ;;  %s651_s16 = smov [#allocation4]   ;;  %s55_s20 = sshll.u32 %s851_s10, 4  ;;  %s56_s20 = int_to_ptr.hbm [resolvable:$true] %s55_s20 }
   0x3   :  { %s45_s17 = sshll.u32 %s651_s16, 4  ;;  %s652_s21 = smov [#allocation6]   ;;  %s46_s17 = int_to_ptr.vmem [resolvable:$true] %s45_s17 }
   0x4   :  { %48 = dma.hbm_to_vmem [thread:$0]  %s44_s15, 16, %s46_s17, [#allocation5]  }
   0x5   :  { %s57_s22 = sshll.u32 %s652_s21, 4  ;;  %s653_s23 = smov 64   ;;  %s58_s22 = int_to_ptr.vmem [resolvable:$true] %s57_s22 }
   0x6   :  { %s654_s24 = smov 4  }
   0x7   :  { %63 = dma.hbm_to_vmem [thread:$0]  %s56_s20, 128, %s58_s22, [#allocation7], %s653_s23, %s653_s23, %s654_s24  }
   0x8   :  { %647 = dma.done.wait [#allocation5], 16  }
   0x9   :  { %648 = vsyncadd [#allocation5], 4294967280 }
   0xa   :  { %649 = dma.done.wait [#allocation7], 128  }
   0xb   :  { %650 = vsyncadd [#allocation7], 4294967168  ;;  %v557_v0 = vld [vmem:[%s847_s6 + $0x8] sm:$0xff]  ;;  %v556_v3 = vld [vmem:[%s847_s6] sm:$0xff]  ;;  %vm105_vm0 = vcmask 261120   ;;  %v182_v45 = vstv %s850_s9  ;;  %vm388_vm2 = vcmask 130048  }
   0xc   :  { %v560_v1 = vld [vmem:[%s845_s4 + $0x8] sm:$0xff]  ;;  %115 = vmatpush.bf16.msra.mxu0 %v557_v0  ;;  %v559_v4 = vld [vmem:[%s845_s4] sm:$0xff]  ;;  %vm234_vm10 = vcmask 253952   ;;  %s655_s24 = smov 32   ;;  %vm485_vm15 = vcmask 254976  }
   0xd   :  { %v563_v2 = vld [vmem:[%s845_s4 + $0x8] sm:$0xff]  ;;  %158 = vmatpush.bf16.msra.mxu1 %v560_v1  ;;  %v79_v5 = vld [vmem:[%s842_s1] sm:$0x3]  ;;  %v577_v19 = vld [vmem:[#allocation4] ss:$0 sm:$0xff] }
   0xe   :  { %273 = vmatpush.bf16.msra.mxu2 %v563_v2  ;;  %v562_v6 = vld [vmem:[%s845_s4] sm:$0xff]  ;;  %v760_v7 = vpack.c.bf16 %v79_v5, %v79_v5  ;;  %v561_v9 = vld [vmem:[%s841_s0 + $0x8] sm:$0xff] }
   0xf   :  { %v558_v8 = vld [vmem:[%s841_s0] sm:$0xff] }
  0x10   :  { %116 = vmatpush.bf16.msra.mxu0 %v556_v3  ;;  %v574_v10 = vld [vmem:[%s848_s7] ss:$0 sm:$0xff] }
  0x11   :  { %159 = vmatpush.bf16.msra.mxu1 %v559_v4  ;;  %v575_v11 = vld [vmem:[%s846_s5] ss:$0 sm:$0xff] }
  0x12   :  { %274 = vmatpush.bf16.msra.mxu2 %v562_v6  ;;  %v576_v17 = vld [vmem:[%s846_s5] ss:$0 sm:$0xff] }
  0x13   :  { %503 = vmatmul.msk.bf16.vlgmr.msra.gmra.mxu0 %vm105_vm0, %v760_v7 }
  0x14   :  { %516 = vmatmul.msk.bf16.vlgmr.msra.gmra.mxu1 %vm105_vm0, %v558_v8 }
  0x15   :  { %531 = vmatmul.msk.bf16.vlgmr.msra.gmra.mxu2 %vm105_vm0, %v561_v9 }
  0x90   :  { %v118_v12 = vpop.f32.mrf.mxu0 }
  0x91   :  { %v161_v13 = vpop.f32.mrf.mxu1  ;;  %v119_v14 = vadd.f32 %v574_v10, %v118_v12 }
  0x92   :  { %v162_v15 = vadd.f32 %v575_v11, %v161_v13 }
  0x93   :  { %v166_v16 = vperm.slane %v119_v14, 0  ;;  %v281_v20 = vperm.slane %v119_v14, 1 }
  0x95   :  { %v167_v18 = vadd.f32 %v166_v16, %v162_v15 }
  0x97   :  { %v169_v21 = vmax.f32 %v167_v18, 0.0 }
  0x98   :  { %v276_v22 = vpop.f32.mrf.mxu2  ;;  %v120_v24 = vpop.f32.mrf.mxu0 }
  0x99   :  { %v277_v23 = vadd.f32 %v576_v17, %v276_v22  ;;  %v163_v25 = vpop.f32.mrf.mxu1  ;;  %v174_v27 = vmul.f32 %v577_v19, %v169_v21 }
  0x9a   :  { %v164_v26 = vadd.f32 %v575_v11, %v163_v25 }
  0x9b   :  { %v282_v28 = vadd.f32 %v281_v20, %v277_v23  ;;  %v176_v30 = vsel %vm105_vm0, %v174_v27, 0.0 }
  0x9c   :  { %v168_v29 = vadd.f32 %v166_v16, %v164_v26  ;;  %177 = vadd.xlane.f32.xlu0 %v176_v30 }
  0x9d   :  { %v284_v31 = vmax.f32 %v282_v28, 0.0 }
  0x9e   :  { %v170_v32 = vmax.f32 %v168_v29, 0.0 }
  0x9f   :  { %v286_v33 = vmul.f32 %v577_v19, %v284_v31 }
  0xa0   :  { %v278_v34 = vpop.f32.mrf.mxu2  ;;  %v175_v35 = vmul.f32 %v577_v19, %v170_v32  ;;  %v564_v32 = vld [vmem:[#allocation6] sm:$0xff] }
  0xa1   :  { %v279_v36 = vadd.f32 %v576_v17, %v278_v34  ;;  %v288_v37 = vsel %vm105_vm0, %v286_v33, 0.0  ;;  %v568_v33 = vld [vmem:[%s853_s12 + $0x8] sm:$0xff]  ;;  %399 = vmatpush.bf16.msrb.mxu0 %v564_v32 }
  0xa2   :  { %289 = vadd.xlane.f32.xlu1 %v288_v37  ;;  %v179_v39 = vsel %vm105_vm0, %v175_v35, 0.0  ;;  %v566_v34 = vld [vmem:[%s852_s11 + $0x8] sm:$0xff]  ;;  %v122_v35 = vld [vmem:[%s841_s0] sm:$0xff]   ;;  %427 = vmatpush.bf16.msrb.mxu1 %v568_v33 }
  0xa3   :  { %v283_v38 = vadd.f32 %v281_v20, %v279_v36  ;;  %375 = vmatpush.bf16.msra.mxu3 %v566_v34 }
  0xa4   :  { %180 = vadd.xlane.f32.xlu0 %v179_v39 }
  0xa5   :  { %v285_v40 = vmax.f32 %v283_v38, 0.0 }
  0xa7   :  { %v287_v41 = vmul.f32 %v577_v19, %v285_v40  ;;  %v567_v40 = vld [vmem:[%s853_s12] sm:$0xff] }
  0xa8   :  { %428 = vmatpush.bf16.msrb.mxu1 %v567_v40 }
  0xa9   :  { %v291_v42 = vsel %vm105_vm0, %v287_v41, 0.0  ;;  %v82_v41 = vld [vmem:[%s844_s3] sm:$0x1] }
  0xaa   :  { %292 = vadd.xlane.f32.xlu1 %v291_v42  ;;  %545 = vmatmul.msk.bf16.vlgmr.msrb.gmra.mxu0 %vm388_vm2, %v82_v41 }
  0xab   :  { %554 = vmatmul.msk.bf16.vlgmr.msrb.gmra.mxu1 %vm105_vm0, %v760_v7 }
 0x10f   :  { %v178_v43 = vpop.xlane.xlu0 %177 }
 0x110   :  { %v183_v47 = vadd.f32 %v182_v45, %v178_v43  ;;  %v565_v43 = vld [vmem:[%s852_s11] sm:$0xff] }
 0x111   :  { %376 = vmatpush.bf16.msra.mxu3 %v565_v43 }
 0x115   :  { %v290_v44 = vpop.xlane.xlu1 %289 }
 0x116   :  { %v294_v52 = vadd.f32 %v290_v44, %v182_v45 }
 0x117   :  { %v181_v46 = vpop.xlane.xlu0 %180 }
 0x118   :  { %v184_v48 = vadd.f32 %v182_v45, %v181_v46 }
 0x11a   :  { %v185_v49 = vmax.f32 %v183_v47, %v184_v48 }
 0x11c   :  { %v186_v50 = vrot.slane %v185_v49, 4 }
 0x11d   :  { %v293_v51 = vpop.xlane.xlu1 %292 }
 0x11e   :  { %v295_v53 = vadd.f32 %v293_v51, %v182_v45  ;;  %v187_v54 = vmax.f32 %v185_v49, %v186_v50  ;;  %v221_v45 = vunpack.c.l.bf16 %v122_v35 }
 0x120   :  { %v296_v55 = vmax.f32 %v294_v52, %v295_v53  ;;  %v188_v56 = vrot.slane %v187_v54, 2 }
 0x122   :  { %v297_v57 = vrot.slane %v296_v55, 4  ;;  %v189_v58 = vmax.f32 %v187_v54, %v188_v56  ;;  %v517_v56 = vld [vmem:[%s841_s0 + $0x8] sm:$0xff]  }
 0x124   :  { %v298_v59 = vmax.f32 %v296_v55, %v297_v57  ;;  %v190_v60 = vrot.slane %v189_v58, 1 }
 0x126   :  { %v299_v61 = vrot.slane %v298_v59, 2  ;;  %v191_v62 = vmax.f32 %v189_v58, %v190_v60 }
 0x128   :  { %v300_v63 = vmax.f32 %v298_v59, %v299_v61  ;;  %v192_v0 = vsub.f32 %v183_v47, %v191_v62  ;;  %v193_v1 = vsub.f32 %v184_v48, %v191_v62  ;;  %v222_v48 = vunpack.c.h.bf16 %v122_v35 }
 0x129   :  { %v332_v61 = vunpack.c.l.bf16 %v517_v56  ;;  %v333_v62 = vunpack.c.h.bf16 %v517_v56 }
 0x12a   :  { %v301_v2 = vrot.slane %v300_v63, 1  ;;  %v194_v3 = vmul.f32 1.442695, %v192_v0  ;;  %v196_v4 = vmul.f32 1.442695, %v193_v1 }
 0x12c   :  { %v302_v5 = vmax.f32 %v300_v63, %v301_v2  ;;  %579 = vpow2.f32 %v194_v3 }
 0x12d   :  { %581 = vpow2.f32 %v196_v4 }
 0x12e   :  { %v303_v6 = vsub.f32 %v294_v52, %v302_v5  ;;  %v304_v8 = vsub.f32 %v295_v53, %v302_v5 }
 0x130   :  { %v305_v9 = vmul.f32 1.442695, %v303_v6  ;;  %v307_v10 = vmul.f32 1.442695, %v304_v8 }
 0x132   :  { %583 = vpow2.f32 %v305_v9  ;;  %v580_v11 = vpop.eup %579 }
 0x133   :  { %585 = vpow2.f32 %v307_v10  ;;  %v582_v12 = vpop.eup %581 }
 0x134   :  { %v198_v13 = vadd.f32 %v582_v12, %v580_v11 }
 0x136   :  { %v199_v14 = vrot.slane %v198_v13, 4 }
 0x138   :  { %v788_v15 = vpop.eup %583  ;;  %v200_v17 = vadd.f32 %v199_v14, %v198_v13 }
 0x139   :  { %v790_v16 = vpop.eup %585 }
 0x13a   :  { %v309_v18 = vadd.f32 %v790_v16, %v788_v15  ;;  %v201_v19 = vrot.slane %v200_v17, 2 }
 0x13c   :  { %v310_v20 = vrot.slane %v309_v18, 4  ;;  %v202_v21 = vadd.f32 %v201_v19, %v200_v17 }
 0x13e   :  { %v311_v22 = vadd.f32 %v310_v20, %v309_v18  ;;  %v203_v23 = vrot.slane %v202_v21, 1 }
 0x140   :  { %v312_v24 = vrot.slane %v311_v22, 2  ;;  %v204_v25 = vadd.f32 %v203_v23, %v202_v21 }
 0x142   :  { %v313_v26 = vadd.f32 %v312_v24, %v311_v22  ;;  %587 = vrcp.f32 %v204_v25  ;;  %v216_v36 = vand.u32 2147483648, %v204_v25  ;;  %v214_v39 = vand.u32 2147483647, %v204_v25 }
 0x143   :  { %vm210_vm3 = vweird.f32 %v204_v25 }
 0x144   :  { %v314_v27 = vrot.slane %v313_v26, 1  ;;  %v217_v46 = vor.u32 1.1754944e-38, %v216_v36  ;;  %vm215_vm5 = vcmp.eq.f32.partialorder %v214_v39, 8.507059e+37  ;;  %v80_v36 = vld [vmem:[%s843_s2] sm:$0x3] }
 0x146   :  { %v315_v28 = vadd.f32 %v314_v27, %v313_v26  ;;  %v430_v26 = vpop.f32.mrf.mxu1 }
 0x148   :  { %589 = vrcp.f32 %v315_v28  ;;  %v588_v29 = vpop.eup %587  ;;  %v327_v50 = vand.u32 2147483648, %v315_v28  ;;  %v325_v53 = vand.u32 2147483647, %v315_v28  ;;  %vm321_vm7 = vweird.f32 %v315_v28 }
 0x149   :  { %v206_v30 = vmul.f32 %v588_v29, %v204_v25  ;;  %vm211_vm1 = vweird.f32 %v588_v29  ;;  %v401_v25 = vpop.f32.mrf.mxu0 }
 0x14a   :  { %vm212_vm4 = vmor %vm210_vm3, %vm211_vm1  ;;  %v328_v60 = vor.u32 1.1754944e-38, %v327_v50  ;;  %vm326_vm9 = vcmp.eq.f32.partialorder %v325_v53, 8.507059e+37 }
 0x14b   :  { %v207_v31 = vsub.f32 1.0, %v206_v30 }
 0x14d   :  { %v208_v38 = vmul.f32 %v588_v29, %v207_v31  ;;  %v578_v31 = vld [vmem:[%s854_s13] ss:$0 sm:$0xff] }
 0x14e   :  { %v590_v37 = vpop.eup %589 }
 0x14f   :  { %v317_v42 = vmul.f32 %v590_v37, %v315_v28  ;;  %v209_v44 = vadd.f32 %v588_v29, %v208_v38  ;;  %vm322_vm6 = vweird.f32 %v590_v37  ;;  %v432_v28 = vpop.f32.mrf.mxu1 }
 0x150   :  { %vm323_vm8 = vmor %vm321_vm7, %vm322_vm6 }
 0x151   :  { %v318_v47 = vsub.f32 1.0, %v317_v42  ;;  %v213_v49 = vsel %vm212_vm4, %v588_v29, %v209_v44  ;;  %v403_v27 = vpop.f32.mrf.mxu0 }
 0x152   :  { %v218_v51 = vsel %vm215_vm5, %v217_v46, %v213_v49 }
 0x153   :  { %v319_v52 = vmul.f32 %v590_v37, %v318_v47  ;;  %v219_v54 = vmul.f32 %v580_v11, %v218_v51  ;;  %v220_v55 = vmul.f32 %v582_v12, %v218_v51 }
 0x155   :  { %v320_v57 = vadd.f32 %v590_v37, %v319_v52  ;;  %v223_v58 = vmul.f32 %v221_v45, %v219_v54  ;;  %v224_v59 = vmul.f32 %v222_v48, %v220_v55 }
 0x157   :  { %v324_v63 = vsel %vm323_vm8, %v590_v37, %v320_v57  ;;  %v225_v0 = vsel %vm105_vm0, %v223_v58, 0.0  ;;  %v226_v1 = vsel %vm105_vm0, %v224_v59, 0.0 }
 0x158   :  { %v329_v2 = vsel %vm326_vm9, %v328_v60, %v324_v63  ;;  %v227_v3 = vadd.f32 %v226_v1, %v225_v0 }
 0x159   :  { %v330_v4 = vmul.f32 %v788_v15, %v329_v2  ;;  %v331_v5 = vmul.f32 %v790_v16, %v329_v2 }
 0x15a   :  { %v228_v6 = vrot.slane %v227_v3, 4 }
 0x15b   :  { %v334_v7 = vmul.f32 %v332_v61, %v330_v4  ;;  %v335_v8 = vmul.f32 %v333_v62, %v331_v5 }
 0x15c   :  { %v229_v9 = vadd.f32 %v228_v6, %v227_v3 }
 0x15d   :  { %v336_v10 = vsel %vm105_vm0, %v334_v7, 0.0  ;;  %v337_v11 = vsel %vm105_vm0, %v335_v8, 0.0 }
 0x15e   :  { %v338_v12 = vadd.f32 %v337_v11, %v336_v10  ;;  %v230_v13 = vrot.slane %v229_v9, 2 }
 0x160   :  { %v339_v14 = vrot.slane %v338_v12, 4  ;;  %v231_v17 = vadd.f32 %v230_v13, %v229_v9 }
 0x162   :  { %v340_v18 = vadd.f32 %v339_v14, %v338_v12  ;;  %v232_v19 = vrot.slane %v231_v17, 1 }
 0x164   :  { %v341_v20 = vrot.slane %v340_v18, 2  ;;  %v233_v21 = vadd.f32 %v232_v19, %v231_v17 }
 0x166   :  { %v342_v15 = vadd.f32 %v341_v20, %v340_v18  ;;  %235 = vst.msk [vmem:[#allocation2] sm:$0x1] %vm234_vm10, %v233_v21 }
 0x168   :  { %v343_v16 = vrot.slane %v342_v15, 1 }
 0x16a   :  { %v344_v22 = vadd.f32 %v343_v16, %v342_v15 }
 0x16c   :  { %345 = vst.msk [vmem:[#allocation2 + $0x1] sm:$0x1] %vm234_vm10, %v344_v22 }
 0x173   :  { %v346_v23 = vld [vmem:[#allocation2] sm:$0x3] }
 0x174   :  { %v347_v24 = vpack.c.bf16 %v346_v23, %v346_v23 }
 0x176   :  { %540 = vmatmul.msk.bf16.vlgmr.msra.gmra.mxu3 %vm105_vm0, %v347_v24  ;;  %vm487_vm0 = vcmask 517376  }
 0x1f9   :  { %v378_v29 = vpop.f32.mrf.mxu3 }
 0x1fa   :  { %v402_v30 = vadd.f32 %v401_v25, %v378_v29 }
 0x1fc   :  { %v434_v32 = vadd.f32 %v430_v26, %v402_v30 }
 0x1fe   :  { %v439_v33 = vadd.f32 %v578_v31, %v434_v32 }
 0x200   :  { %591 = vtanh.f32 %v439_v33  ;;  %v555_v37 = vmul.f32 -1.442695, %v439_v33 }
 0x201   :  { %v380_v34 = vpop.f32.mrf.mxu3 }
 0x202   :  { %593 = vpow2.f32 %v555_v37 }
 0x206   :  { %v592_v35 = vpop.eup %591 }
 0x207   :  { %466 = vrot.lane.b32.xlu2 %v592_v35, %s653_s23 }
 0x208   :  { %v594_v38 = vpop.eup %593 }
 0x209   :  { %v443_v39 = vadd.f32 1.0, %v594_v38 }
 0x20b   :  { %595 = vrcp.f32 %v443_v39  ;;  %v455_v45 = vand.u32 2147483648, %v443_v39  ;;  %vm449_vm12 = vweird.f32 %v443_v39  ;;  %v453_v46 = vand.u32 2147483647, %v443_v39 }
 0x20d   :  { %v456_v48 = vor.u32 1.1754944e-38, %v455_v45  ;;  %vm454_vm14 = vcmp.eq.f32.partialorder %v453_v46, 8.507059e+37 }
 0x20f   :  { %461 = vrot.lane.b32.xlu2 %v80_v36, %s655_s24 }
 0x211   :  { %v596_v40 = vpop.eup %595 }
 0x212   :  { %v445_v41 = vmul.f32 %v596_v40, %v443_v39  ;;  %vm450_vm11 = vweird.f32 %v596_v40 }
 0x213   :  { %vm451_vm13 = vmor %vm449_vm12, %vm450_vm11 }
 0x214   :  { %v446_v42 = vsub.f32 1.0, %v445_v41 }
 0x216   :  { %v447_v43 = vmul.f32 %v596_v40, %v446_v42 }
 0x218   :  { %v448_v44 = vadd.f32 %v596_v40, %v447_v43 }
 0x21a   :  { %v452_v47 = vsel %vm451_vm13, %v596_v40, %v448_v44 }
 0x21b   :  { %v457_v50 = vsel %vm454_vm14, %v456_v48, %v452_v47 }
 0x261   :  { %v467_v49 = vpop.permute.xlu2 %466 }
 0x262   :  { %v469_v51 = vmul.f32 %v467_v49, %v457_v50 }
 0x264   :  { %471 = vrot.lane.b32.xlu0 %v469_v51, %s655_s24 }
 0x269   :  { %v462_v52 = vpop.permute.xlu2 %461 }
 0x26a   :  { %v464_v53 = vmul.f32 %v462_v52, %v457_v50 }
 0x2d6   :  { %v472_v54 = vpop.permute.xlu0 %471 }
 0x2d7   :  { %v474_v55 = vadd.f32 %v472_v54, %v464_v53 }
 0x2d9   :  { %597 = vtanh.f32 %v474_v55 }
 0x2df   :  { %v598_v56 = vpop.eup %597 }
 0x2e0   :  { %477 = vrot.lane.b32.xlu1 %v598_v56, %s653_s23 }
 0x352   :  { %v478_v57 = vpop.permute.xlu1 %477 }
 0x353   :  { %v480_v58 = vmul.f32 %v478_v57, %v457_v50 }
 0x355   :  { %482 = vrot.lane.b32.xlu2 %v480_v58, %s655_s24 }
 0x3af   :  { %v483_v59 = vpop.permute.xlu2 %482 }
 0x3b0   :  { %486 = vst.msk [vmem:[%s855_s14] sm:$0x3] %vm485_vm15, %v483_v59 }
 0x3b1   :  { %488 = vst.msk [vmem:[%s855_s14] sm:$0x3] %vm487_vm0, %v474_v55 }
 0x3b2   :  { %493 = vsyncpa [#allocation5], 1 }
 0x3b3   :  { %494 = vsyncpa [#allocation7], 1 }

</bundles_post_ra>
